<compile_context>
chip_gen: v5e
topology: v5e:2x2
jax: 0.10.0
libtpu: 0.0.40
codegen_flags: <defaults>
</compile_context>

<pallas_src>
import jax
import jax.numpy as jnp
from jax.experimental import pallas as pl
from jax.experimental.pallas import tpu as pltpu


def _round_up(a: int, b: int) -> int:
    return (a + b - 1) // b * b


def _conv1d_kernel_single_k(x_ref, w_ref, b_ref, o_ref):
    # Whole reduction fits in one tile: no accumulator scratch, no epilogue.
    acc = jnp.dot(x_ref[...], w_ref[...], preferred_element_type=jnp.float32)
    o_ref[...] = (acc + b_ref[...].astype(jnp.float32)).astype(o_ref.dtype)


def _conv1d_kernel_multi_k(x_ref, w_ref, b_ref, o_ref, acc_ref):
    # x_ref: (tm, tk)  w_ref: (tk, tn)  b_ref: (1, tn)
    # o_ref: (tm, tn)  acc_ref: (tm, tn) f32 scratch
    k = pl.program_id(2)

    @pl.when(k == 0)
    def _():
        acc_ref[...] = jnp.zeros_like(acc_ref)

    acc_ref[...] += jnp.dot(
        x_ref[...], w_ref[...], preferred_element_type=jnp.float32
    )

    @pl.when(k == pl.num_programs(2) - 1)
    def _():
        # Bias added exactly once, in the epilogue.
        o_ref[...] = (acc_ref[...] + b_ref[...].astype(jnp.float32)).astype(o_ref.dtype)


def conv1d_forward(x, weight, bias, *, tm=512, tn=256, tk=512, mxu_dtype=None):
    """Pallas equivalent of Conv1D.forward: y = bias + x @ weight.

    x:      [..., nx]
    weight: (nx, nf)   (transposed-linear convention, like HF Conv1D)
    bias:   (nf,)
    mxu_dtype: optional operand dtype for the MXU (e.g. jnp.bfloat16);
               accumulation stays f32 and output keeps x.dtype.
    returns [..., nf]
    """
    nx, nf = weight.shape
    assert x.shape[-1] == nx
    lead = x.shape[:-1]
    out_dtype = x.dtype

    x2d = x.reshape(-1, nx)
    M = x2d.shape[0]

    if mxu_dtype is not None:
        x2d = x2d.astype(mxu_dtype)
        weight = weight.astype(mxu_dtype)

    in_itemsize = jnp.dtype(x2d.dtype).itemsize
    # sublane packing: 8 rows for 32-bit, 16 for bf16, 32 for int8/fp8
    sub = max(8, 32 // max(in_itemsize, 1))

    # Effective tiles (never tile a dim that is already <= the requested tile).
    tm_eff = _round_up(min(tm, M), sub) if M <= tm else _round_up(tm, sub)
    M_pad = _round_up(M, tm_eff)

    if nf <= tn:
        tn_eff, nf_pad = nf, nf
    else:
        tn_eff, nf_pad = tn, _round_up(nf, tn)

    if nx <= tk:
        tk_eff, nx_pad = nx, nx
    else:
        tk_eff, nx_pad = tk, _round_up(nx, tk)

    # Zero-pad to tile multiples (padded rows/cols contribute nothing; output
    # is sliced back afterwards).
    if M_pad != M or nx_pad != nx:
        x2d = jnp.pad(x2d, ((0, M_pad - M), (0, nx_pad - nx)))
    w = weight
    if nx_pad != nx or nf_pad != nf:
        w = jnp.pad(w, ((0, nx_pad - nx), (0, nf_pad - nf)))
    b2d = bias.astype(jnp.float32).reshape(1, nf)
    if nf_pad != nf:
        b2d = jnp.pad(b2d, ((0, 0), (0, nf_pad - nf)))

    grid = (M_pad // tm_eff, nf_pad // tn_eff, nx_pad // tk_eff)
    single_k = grid[2] == 1

    # Conservative scoped-VMEM request: double-buffered x/w/bias/out tiles
    # + f32 accumulator, with margin; capped at 48 MiB (safe on v7x's 64 MiB).
    est = (
        2 * (tm_eff * tk_eff + tk_eff * tn_eff) * in_itemsize
        + 2 * tn_eff * 4
        + 2 * tm_eff * tn_eff * jnp.dtype(out_dtype).itemsize
        + (0 if single_k else tm_eff * tn_eff * 4)
    )
    vmem_limit = int(min(max(4 * est, 32 * 1024 * 1024), 48 * 1024 * 1024))

    kernel = _conv1d_kernel_single_k if single_k else _conv1d_kernel_multi_k
    scratch_shapes = [] if single_k else [pltpu.VMEM((tm_eff, tn_eff), jnp.float32)]

    out2d = pl.pallas_call(
        kernel,
        out_shape=jax.ShapeDtypeStruct((M_pad, nf_pad), out_dtype),
        grid_spec=pltpu.PrefetchScalarGridSpec(
            num_scalar_prefetch=0,
            grid=grid,
            in_specs=[
                pl.BlockSpec((tm_eff, tk_eff), lambda i, j, k: (i, k)),  # x row/K tile
                pl.BlockSpec((tk_eff, tn_eff), lambda i, j, k: (k, j)),  # weight slab
                pl.BlockSpec((1, tn_eff), lambda i, j, k: (0, j)),       # bias slab
            ],
            out_specs=pl.BlockSpec((tm_eff, tn_eff), lambda i, j, k: (i, j)),
            scratch_shapes=scratch_shapes,
        ),
        compiler_params=pltpu.CompilerParams(
            dimension_semantics=("parallel", "parallel", "arbitrary"),
            vmem_limit_bytes=vmem_limit,
        ),
    )(x2d, w, b2d)

    out2d = out2d[:M, :nf]
    return out2d.reshape(*lead, nf)


class TransformerBasePallas:
    """JAX/Pallas analogue of TransformerBase; forward is a no-op like the
    PyTorch parent class. The Conv1D building block's compute lives in
    `conv1d_forward` above."""
    model_name = "transformer_model"

    def forward(self):
        # TODO(synk): TransformerBase.forward is `pass` in the reference; nothing to compute.
        return None


if __name__ == "__main__":
    key = jax.random.PRNGKey(0)
    k_x, k_w, k_x2, k_w2, k_x3, k_w3 = jax.random.split(key, 6)

    # Test 1: small shapes consistent with the module (batch=2, seq=8, nx=32, nf=64), f32.
    batch, seq, nx, nf = 2, 8, 32, 64
    x = jax.random.normal(k_x, (batch, seq, nx), dtype=jnp.float32)
    # Deterministic init matching Conv1D.__init__: weight ~ N(0, 0.02), bias = 0.
    weight = 0.02 * jax.random.normal(k_w, (nx, nf), dtype=jnp.float32)
    bias = jnp.zeros((nf,), dtype=jnp.float32)

    y = jax.block_until_ready(conv1d_forward(x, weight, bias))
    y_ref = (x.reshape(-1, nx) @ weight + bias).reshape(batch, seq, nf)
    assert y.shape == (batch, seq, nf)
    assert jnp.allclose(y, y_ref, atol=1e-5, rtol=1e-5)

    # Test 2: non-tile-multiple rows and nf > tn (exercises padding + nf tiling).
    b2, s2, nx2, nf2 = 3, 7, 160, 384
    x2 = jax.random.normal(k_x2, (b2, s2, nx2), dtype=jnp.float32)
    w2 = 0.02 * jax.random.normal(k_w2, (nx2, nf2), dtype=jnp.float32)
    bias2 = jnp.zeros((nf2,), dtype=jnp.float32)
    y2 = jax.block_until_ready(conv1d_forward(x2, w2, bias2))
    y2_ref = (x2.reshape(-1, nx2) @ w2 + bias2).reshape(b2, s2, nf2)
    assert jnp.allclose(y2, y2_ref, atol=1e-4, rtol=1e-4)

    # Test 3: nx > tk (exercises the multi-K accumulator path).
    b3, s3, nx3, nf3 = 2, 64, 1088, 256
    x3 = jax.random.normal(k_x3, (b3, s3, nx3), dtype=jnp.float32)
    w3 = 0.02 * jax.random.normal(k_w3, (nx3, nf3), dtype=jnp.float32)
    bias3 = 0.1 * jnp.ones((nf3,), dtype=jnp.float32)
    y3 = jax.block_until_ready(conv1d_forward(x3, w3, bias3))
    y3_ref = (x3.reshape(-1, nx3) @ w3 + bias3).reshape(b3, s3, nf3)
    assert jnp.allclose(y3, y3_ref, atol=1e-3, rtol=1e-3)

    # Test 4: bf16 MXU operands (v6e/v7x fast path) with f32 accumulation.
    y4 = jax.block_until_ready(conv1d_forward(x, weight, bias, mxu_dtype=jnp.bfloat16))
    assert jnp.allclose(y4, y_ref, atol=5e-2, rtol=5e-2)

    print("KERNEL_OK")
</pallas_src>

<mosaic_0001>
module attributes {stable_mosaic.version = 11 : i64} {
  func.func @_conv1d_kernel_single_k(%arg0: i32, %arg1: i32, %arg2: i32, %arg3: memref<16x32xf32, #tpu.memory_space<vmem>>, %arg4: memref<32x64xf32, #tpu.memory_space<vmem>>, %arg5: memref<1x64xf32, #tpu.memory_space<vmem>>, %arg6: memref<16x64xf32, #tpu.memory_space<vmem>>) attributes {dimension_semantics = [#tpu.dimension_semantics<parallel>, #tpu.dimension_semantics<parallel>, #tpu.dimension_semantics<arbitrary>], iteration_bounds = array<i64: 1, 1, 1>, scalar_prefetch = 0 : i64, scratch_operands = 0 : i64, tpu.core_type = #tpu.core_type<tc>, window_params = [{transform_indices = @transform_0, window_bounds = array<i64: 16, 32>}, {transform_indices = @transform_1, window_bounds = array<i64: 32, 64>}, {transform_indices = @transform_2, window_bounds = array<i64: 1, 64>}, {transform_indices = @transform_3, window_bounds = array<i64: 16, 64>}]} {
    %c0 = arith.constant 0 : index
    %c0_0 = arith.constant 0 : index
    %0 = vector.load %arg3[%c0, %c0_0] : memref<16x32xf32, #tpu.memory_space<vmem>>, vector<16x32xf32>
    %c0_1 = arith.constant 0 : index
    %c0_2 = arith.constant 0 : index
    %1 = vector.load %arg4[%c0_1, %c0_2] : memref<32x64xf32, #tpu.memory_space<vmem>>, vector<32x64xf32>
    %cst = arith.constant dense<0.000000e+00> : vector<16x64xf32>
    %2 = tpu.matmul %0, %1, %cst {dimension_numbers = #tpu.dot_dimension_numbers<[1], [0], [0], [1], [0, 0, 1, 1], [], []>} : vector<16x32xf32>, vector<32x64xf32>, vector<16x64xf32> -> vector<16x64xf32>
    %c0_3 = arith.constant 0 : index
    %c0_4 = arith.constant 0 : index
    %3 = vector.load %arg5[%c0_3, %c0_4] : memref<1x64xf32, #tpu.memory_space<vmem>>, vector<1x64xf32>
    %4 = vector.broadcast %3 : vector<1x64xf32> to vector<16x64xf32>
    %5 = arith.addf %2, %4 : vector<16x64xf32>
    %c0_5 = arith.constant 0 : index
    %c0_6 = arith.constant 0 : index
    %6 = vector.load %arg6[%c0_5, %c0_6] : memref<16x64xf32, #tpu.memory_space<vmem>>, vector<16x64xf32>
    tpu.vector_store %arg6[%c0_5, %c0_6], %5 {strides = array<i32>} : memref<16x64xf32, #tpu.memory_space<vmem>>, vector<16x64xf32>,
    return
  }
  func.func @transform_0(%arg0: i32, %arg1: i32, %arg2: i32) -> (i32, i32) {
    %c0_i32 = arith.constant 0 : i32
    return %arg0, %arg2 : i32, i32
  }
  func.func @transform_1(%arg0: i32, %arg1: i32, %arg2: i32) -> (i32, i32) {
    %c0_i32 = arith.constant 0 : i32
    return %arg2, %arg1 : i32, i32
  }
  func.func @transform_2(%arg0: i32, %arg1: i32, %arg2: i32) -> (i32, i32) {
    %c0_i32 = arith.constant 0 : i32
    %c0_i32_0 = arith.constant 0 : i32
    return %c0_i32, %arg1 : i32, i32
  }
  func.func @transform_3(%arg0: i32, %arg1: i32, %arg2: i32) -> (i32, i32) {
    %c0_i32 = arith.constant 0 : i32
    return %arg0, %arg1 : i32, i32
  }
}

</mosaic_0001>

<bundles_post_ra>
// kernel: tpu_custom_call.1
= control target key start
LH: loop header
LB: loop body
LE: loop exit
PB: predicated region body
PF: predicated region fallthrough
CT: control target
= control target key end

     0   :  { %8 = vsyncpa [#allocation3], 0  ;;  %s246_s0 = inlined_call_operand.hbm [shape: f32[16,32], index: 0, kind: input, shape index: {}]   ;;  %s247_s1 = inlined_call_operand.hbm [shape: f32[32,64], index: 1, kind: input, shape index: {}]   ;;  %s248_s2 = inlined_call_operand.vmem [shape: f32[1,64], index: 2, kind: input, shape index: {}]   ;;  %s249_s3 = inlined_call_operand.hbm [shape: f32[16,64], index: 3, kind: output, shape index: {}]  }
   0x1   :  { %9 = vsyncpa [#allocation6], 0 }
   0x2   :  { %10 = vsyncpa [#allocation4], 0  ;;  %s15_s14 = sshll.u32 %s246_s0, 4  ;;  %s200_s15 = smov [#allocation2]   ;;  %s16_s14 = int_to_ptr.hbm [resolvable:$true] %s15_s14 }
   0x3   :  { %s17_s16 = sshll.u32 %s200_s15, 4  ;;  %s28_s19 = sshll.u32 %s247_s1, 4  ;;  %s18_s16 = int_to_ptr.vmem [resolvable:$true] %s17_s16  ;;  %s29_s19 = int_to_ptr.hbm [resolvable:$true] %s28_s19 }
   0x4   :  { %s201_s20 = smov 128   ;;  %s202_s21 = smov 8  }
   0x5   :  { %23 = dma.hbm_to_vmem [thread:$0]  %s16_s14, 256, %s18_s16, [#allocation3], %s201_s20, %s201_s20, %s202_s21  }
   0x6   :  { %s203_s22 = smov [#allocation5]  }
   0x7   :  { %s30_s23 = sshll.u32 %s203_s22, 4  ;;  %s31_s23 = int_to_ptr.vmem [resolvable:$true] %s30_s23 }
   0x8   :  { %36 = dma.hbm_to_vmem [thread:$0]  %s29_s19, 512, %s31_s23, [#allocation6], %s201_s20, %s201_s20, %s202_s21  }
   0x9   :  { %194 = dma.done.wait [#allocation3], 256  }
   0xa   :  { %195 = vsyncadd [#allocation3], 4294967040 }
   0xb   :  { %196 = dma.done.wait [#allocation6], 512  }
   0xc   :  { %197 = vsyncadd [#allocation6], 4294966784  ;;  %v52_v0 = vld [vmem:[#allocation5 + $0x18] sm:$0xff]  ;;  %v51_v1 = vld [vmem:[#allocation5 + $0x10] sm:$0xff]  ;;  %vm57_vm0 = vcmask 261120   ;;  %s204_s24 = smov [#allocation7]  }
   0xd   :  { %76 = vmatpush.msra.mxu0 %v52_v0  ;;  %112 = vmatpush.msra.mxu1 %v52_v0  ;;  %v50_v2 = vld [vmem:[#allocation5 + $0x8] sm:$0xff]  ;;  %v49_v3 = vld [vmem:[#allocation5] sm:$0xff]  ;;  %v47_v4 = vld [vmem:[#allocation2] sm:$0xff]  ;;  %s94_s25 = sshll.u32 %s204_s24, 4  ;;  %s96_s28 = sshll.u32 %s249_s3, 4  ;;  %vm87_vm1 = vcmask 523264   ;;  %s95_s25 = int_to_ptr.vmem [resolvable:$true] %s94_s25  ;;  %s97_s28 = int_to_ptr.hbm [resolvable:$true] %s96_s28 }
   0xe   :  { %v48_v5 = vld [vmem:[#allocation2 + $0x8] sm:$0xff]  ;;  %v121_v6 = vld [vmem:[%s248_s2] ss:$0 sm:$0xff] }
   0xf   :  { %77 = vmatpush.msra.mxu0 %v51_v1  ;;  %113 = vmatpush.msra.mxu1 %v51_v1 }
  0x11   :  { %78 = vmatpush.msra.mxu0 %v50_v2  ;;  %114 = vmatpush.msra.mxu1 %v50_v2 }
  0x13   :  { %79 = vmatpush.msra.mxu0 %v49_v3  ;;  %115 = vmatpush.msra.mxu1 %v49_v3 }
  0x14   :  { %110 = vmatmul.msk.f32.vlgmr.msra.gmra.mxu0 %vm57_vm0, %v47_v4  ;;  %111 = vmatmul.msk.f32.vlgmr.msra.gmra.mxu1 %vm57_vm0, %v48_v5 }
  0x91   :  { %v81_v7 = vpop.f32.mrf.mxu0  ;;  %v84_v8 = vpop.f32.mrf.mxu1 }
  0x92   :  { %v82_v9 = vadd.f32 %v121_v6, %v81_v7  ;;  %v85_v10 = vadd.f32 %v121_v6, %v84_v8 }
  0x94   :  { %88 = vst.msk [vmem:[#allocation7] sm:$0xff] %vm87_vm1, %v82_v9 }
  0x95   :  { %89 = vst.msk [vmem:[#allocation7 + $0x8] sm:$0xff] %vm87_vm1, %v85_v10 }
  0x96   :  { %102 = dma.vmem_to_hbm [thread:$0]  %s95_s25, 256, %s97_s28, [#allocation4], %s201_s20, %s201_s20, %s202_s21  }
  0x97   :  { %198 = dma.done.wait [#allocation4], 256  }
  0x98   :  { %199 = vsyncadd [#allocation4], 4294967040 }
  0x99   :  { %107 = vsyncpa [#allocation3], 1 }
  0x9a   :  { %108 = vsyncpa [#allocation6], 1 }
  0x9b   :  { %109 = vsyncpa [#allocation4], 1 }

</bundles_post_ra>
